<compile_context>
chip_gen: v6e
topology: v6e:2x2x1
jax: 0.10.0
libtpu: 0.0.40
codegen_flags: <defaults>
</compile_context>

<pallas_src>
import functools

import jax
import jax.numpy as jnp
from jax.experimental import pallas as pl
from jax.experimental.pallas import tpu as pltpu


def _round_up(x: int, m: int) -> int:
    return ((x + m - 1) // m) * m


def _gnn_step_kernel(a_ref, h_ref, wt_ref, b_ref, o_ref, acc_ref):
    """One GNN step, tiled over (row-tile i, contraction-tile k).

    a_ref:   (tm, tk)          tile of (padded) adjacency
    h_ref:   (tk, H_pad)       contraction slice of (padded) hidden states
    wt_ref:  (H_pad, H_pad)    pre-transposed linear weight (in, out)
    b_ref:   (1,  H_pad)       zero-padded bias
    o_ref:   (tm, H_pad)       output tile (same block across k -> resident)
    acc_ref: (tm, H_pad) f32   accumulator scratch for A @ h
    """
    k = pl.program_id(1)

    @pl.when(k == 0)
    def _init():
        acc_ref[...] = jnp.zeros_like(acc_ref)

    # Partial A @ h over this contraction tile (pure MXU push, f32 accumulate).
    acc_ref[...] += jnp.dot(
        a_ref[...],
        h_ref[...].astype(a_ref.dtype),
        preferred_element_type=jnp.float32,
    )

    @pl.when(k == pl.num_programs(1) - 1)
    def _finalize():
        # hidden = relu((A @ hidden) @ W.T + b); W already transposed on host.
        z = jnp.dot(acc_ref[...], wt_ref[...],
                    preferred_element_type=jnp.float32) + b_ref[...]
        o_ref[...] = jnp.maximum(z, 0.0).astype(o_ref.dtype)


def _gnn_step(a_pad, h_pad, wt_pad, b_pad, *, tm: int, tk: int):
    n_pad = a_pad.shape[0]
    hp = h_pad.shape[1]
    grid = (n_pad // tm, n_pad // tk)
    return pl.pallas_call(
        _gnn_step_kernel,
        out_shape=jax.ShapeDtypeStruct((n_pad, hp), h_pad.dtype),
        grid_spec=pltpu.PrefetchScalarGridSpec(
            num_scalar_prefetch=0,
            grid=grid,
            in_specs=[
                pl.BlockSpec((tm, tk), lambda i, k: (i, k)),      # A tile
                pl.BlockSpec((tk, hp), lambda i, k: (k, 0)),      # h slice
                pl.BlockSpec((hp, hp), lambda i, k: (0, 0)),      # W^T (full)
                pl.BlockSpec((1, hp), lambda i, k: (0, 0)),       # bias
            ],
            out_specs=pl.BlockSpec((tm, hp), lambda i, k: (i, 0)),
            scratch_shapes=[pltpu.VMEM((tm, hp), jnp.float32)],
        ),
        compiler_params=pltpu.CompilerParams(
            dimension_semantics=("parallel", "arbitrary"),
        ),
    )(a_pad, h_pad, wt_pad, b_pad)


@functools.partial(jax.jit, static_argnames=("step", "a_dtype"))
def global_gnn_forward(a_global, hidden_global, weight, bias, *,
                       step: int = 1, a_dtype=None):
    """GlobalGNN forward. Shapes: a_global (N,N), hidden_global (N,H),
    weight (H,H) in PyTorch (out,in) convention, bias (H,)."""
    n, h = hidden_global.shape

    # Pad the feature dim to a lane-dense multiple of 128 and the node dim to
    # the tile size. Zero padding is exact (padded feature columns stay 0).
    hp = _round_up(max(h, 128), 128)
    tile = min(256, _round_up(n, 128))
    tm = tk = tile
    n_pad = _round_up(n, tile)

    a = a_global if a_dtype is None else a_global.astype(a_dtype)
    a_pad = jnp.zeros((n_pad, n_pad), dtype=a.dtype).at[:n, :n].set(a)
    h_cur = jnp.zeros((n_pad, hp), dtype=jnp.float32).at[:n, :h].set(
        hidden_global.astype(jnp.float32))
    wt_pad = jnp.zeros((hp, hp), dtype=jnp.float32).at[:h, :h].set(
        weight.T.astype(jnp.float32))          # pre-transpose once, on host side
    b_pad = jnp.zeros((1, hp), dtype=jnp.float32).at[0, :h].set(
        bias.astype(jnp.float32))

    for _ in range(step):
        h_cur = _gnn_step(a_pad, h_cur, wt_pad, b_pad, tm=tm, tk=tk)

    return h_cur[:n, :h].astype(hidden_global.dtype)


def _reference_forward(a_global, hidden_global, weight, bias, *, step: int = 1):
    h = hidden_global
    for _ in range(step):
        h = a_global @ h
        h = h @ weight.T + bias
        h = jnp.maximum(h, 0.0)
    return h


if __name__ == "__main__":
    # Small synthetic shapes consistent with the module:
    #   N = 64 global nodes, hidden_size = 32, step = 2.
    N = 64
    HIDDEN = 32
    STEP = 2

    key = jax.random.PRNGKey(0)
    k_a, k_h, k_w, k_b = jax.random.split(key, 4)

    # Dense stand-in for A_global (row-normalized like a typical GNN adjacency).
    a_raw = jax.random.uniform(k_a, (N, N), dtype=jnp.float32)
    a_global = a_raw / jnp.sum(a_raw, axis=1, keepdims=True)

    hidden_global = jax.random.normal(k_h, (N, HIDDEN), dtype=jnp.float32)

    # Deterministic nn.Linear-style init: U(-1/sqrt(H), 1/sqrt(H)).
    bound = 1.0 / jnp.sqrt(jnp.float32(HIDDEN))
    weight = jax.random.uniform(
        k_w, (HIDDEN, HIDDEN), minval=-bound, maxval=bound, dtype=jnp.float32
    )
    bias = jax.random.uniform(
        k_b, (HIDDEN,), minval=-bound, maxval=bound, dtype=jnp.float32
    )

    out = global_gnn_forward(a_global, hidden_global, weight, bias, step=STEP)
    out = jax.block_until_ready(out)

    ref = _reference_forward(a_global, hidden_global, weight, bias, step=STEP)
    assert out.shape == (N, HIDDEN)
    assert jnp.allclose(out, ref, atol=1e-4, rtol=1e-4), "mismatch vs reference"

    print("KERNEL_OK")
</pallas_src>

<mosaic_0001>
module attributes {stable_mosaic.version = 11 : i64} {
  func.func @_gnn_step_kernel(%arg0: i32, %arg1: i32, %arg2: memref<128x128xf32, #tpu.memory_space<vmem>>, %arg3: memref<128x128xf32, #tpu.memory_space<vmem>>, %arg4: memref<128x128xf32, #tpu.memory_space<vmem>>, %arg5: memref<1x128xf32, #tpu.memory_space<vmem>>, %arg6: memref<128x128xf32, #tpu.memory_space<vmem>>, %arg7: memref<128x128xf32, #tpu.memory_space<vmem>>) attributes {dimension_semantics = [#tpu.dimension_semantics<parallel>, #tpu.dimension_semantics<arbitrary>], iteration_bounds = array<i64: 1, 1>, scalar_prefetch = 0 : i64, scratch_operands = 1 : i64, tpu.core_type = #tpu.core_type<tc>, window_params = [{transform_indices = @transform_0, window_bounds = array<i64: 128, 128>}, {transform_indices = @transform_1, window_bounds = array<i64: 128, 128>}, {pipeline_mode = #tpu.pipeline_mode<synchronous>, transform_indices = @transform_2, window_bounds = array<i64: 128, 128>}, {pipeline_mode = #tpu.pipeline_mode<synchronous>, transform_indices = @transform_3, window_bounds = array<i64: 1, 128>}, {transform_indices = @transform_4, window_bounds = array<i64: 128, 128>}]} {
    %c0_i32 = arith.constant 0 : i32
    %0 = arith.cmpi eq, %arg1, %c0_i32 : i32
    %1 = arith.extui %0 : i1 to i32
    %c0_i32_0 = arith.constant 0 : i32
    %2 = arith.cmpi ne, %1, %c0_i32_0 : i32
    scf.if %2 {
      %cst_10 = arith.constant 0.000000e+00 : f32
      %12 = vector.broadcast %cst_10 : f32 to vector<128x128xf32>
      %c0_11 = arith.constant 0 : index
      %c0_12 = arith.constant 0 : index
      %13 = vector.load %arg7[%c0_11, %c0_12] : memref<128x128xf32, #tpu.memory_space<vmem>>, vector<128x128xf32>
      tpu.vector_store %arg7[%c0_11, %c0_12], %12 {strides = array<i32>} : memref<128x128xf32, #tpu.memory_space<vmem>>, vector<128x128xf32>,
    } else {
    }
    %c0 = arith.constant 0 : index
    %c0_1 = arith.constant 0 : index
    %3 = vector.load %arg7[%c0, %c0_1] : memref<128x128xf32, #tpu.memory_space<vmem>>, vector<128x128xf32>
    %c0_2 = arith.constant 0 : index
    %c0_3 = arith.constant 0 : index
    %4 = vector.load %arg2[%c0_2, %c0_3] : memref<128x128xf32, #tpu.memory_space<vmem>>, vector<128x128xf32>
    %c0_4 = arith.constant 0 : index
    %c0_5 = arith.constant 0 : index
    %5 = vector.load %arg3[%c0_4, %c0_5] : memref<128x128xf32, #tpu.memory_space<vmem>>, vector<128x128xf32>
    %cst = arith.constant dense<0.000000e+00> : vector<128x128xf32>
    %6 = tpu.matmul %4, %5, %cst {dimension_numbers = #tpu.dot_dimension_numbers<[1], [0], [0], [1], [0, 0, 1, 1], [], []>} : vector<128x128xf32>, vector<128x128xf32>, vector<128x128xf32> -> vector<128x128xf32>
    %7 = arith.addf %3, %6 : vector<128x128xf32>
    %c0_6 = arith.constant 0 : index
    %c0_7 = arith.constant 0 : index
    %8 = vector.load %arg7[%c0_6, %c0_7] : memref<128x128xf32, #tpu.memory_space<vmem>>, vector<128x128xf32>
    tpu.vector_store %arg7[%c0_6, %c0_7], %7 {strides = array<i32>} : memref<128x128xf32, #tpu.memory_space<vmem>>, vector<128x128xf32>,
    %c0_i32_8 = arith.constant 0 : i32
    %9 = arith.cmpi eq, %arg1, %c0_i32_8 : i32
    %10 = arith.extui %9 : i1 to i32
    %c0_i32_9 = arith.constant 0 : i32
    %11 = arith.cmpi ne, %10, %c0_i32_9 : i32
    scf.if %11 {
      %c0_10 = arith.constant 0 : index
      %c0_11 = arith.constant 0 : index
      %12 = vector.load %arg7[%c0_10, %c0_11] : memref<128x128xf32, #tpu.memory_space<vmem>>, vector<128x128xf32>
      %c0_12 = arith.constant 0 : index
      %c0_13 = arith.constant 0 : index
      %13 = vector.load %arg4[%c0_12, %c0_13] : memref<128x128xf32, #tpu.memory_space<vmem>>, vector<128x128xf32>
      %cst_14 = arith.constant dense<0.000000e+00> : vector<128x128xf32>
      %14 = tpu.matmul %12, %13, %cst_14 {dimension_numbers = #tpu.dot_dimension_numbers<[1], [0], [0], [1], [0, 0, 1, 1], [], []>} : vector<128x128xf32>, vector<128x128xf32>, vector<128x128xf32> -> vector<128x128xf32>
      %c0_15 = arith.constant 0 : index
      %c0_16 = arith.constant 0 : index
      %15 = vector.load %arg5[%c0_15, %c0_16] : memref<1x128xf32, #tpu.memory_space<vmem>>, vector<1x128xf32>
      %16 = vector.broadcast %15 : vector<1x128xf32> to vector<128x128xf32>
      %17 = arith.addf %14, %16 : vector<128x128xf32>
      %cst_17 = arith.constant 0.000000e+00 : f32
      %18 = vector.broadcast %cst_17 : f32 to vector<128x128xf32>
      %19 = arith.maximumf %17, %18 : vector<128x128xf32>
      %c0_18 = arith.constant 0 : index
      %c0_19 = arith.constant 0 : index
      %20 = vector.load %arg6[%c0_18, %c0_19] : memref<128x128xf32, #tpu.memory_space<vmem>>, vector<128x128xf32>
      tpu.vector_store %arg6[%c0_18, %c0_19], %19 {strides = array<i32>} : memref<128x128xf32, #tpu.memory_space<vmem>>, vector<128x128xf32>,
    } else {
    }
    return
  }
  func.func @transform_0(%arg0: i32, %arg1: i32) -> (i32, i32) {
    %c0_i32 = arith.constant 0 : i32
    return %arg0, %arg1 : i32, i32
  }
  func.func @transform_1(%arg0: i32, %arg1: i32) -> (i32, i32) {
    %c0_i32 = arith.constant 0 : i32
    %c0_i32_0 = arith.constant 0 : i32
    return %arg1, %c0_i32 : i32, i32
  }
  func.func @transform_2(%arg0: i32, %arg1: i32) -> (i32, i32) {
    %c0_i32 = arith.constant 0 : i32
    %c0_i32_0 = arith.constant 0 : i32
    %c0_i32_1 = arith.constant 0 : i32
    return %c0_i32, %c0_i32_0 : i32, i32
  }
  func.func @transform_3(%arg0: i32, %arg1: i32) -> (i32, i32) {
    %c0_i32 = arith.constant 0 : i32
    %c0_i32_0 = arith.constant 0 : i32
    %c0_i32_1 = arith.constant 0 : i32
    return %c0_i32, %c0_i32_0 : i32, i32
  }
  func.func @transform_4(%arg0: i32, %arg1: i32) -> (i32, i32) {
    %c0_i32 = arith.constant 0 : i32
    %c0_i32_0 = arith.constant 0 : i32
    return %arg0, %c0_i32 : i32, i32
  }
}

</mosaic_0001>

<bundles_post_ra>
// kernel: global_gnn_forward.2
= control target key start
LH: loop header
LB: loop body
LE: loop exit
PB: predicated region body
PF: predicated region fallthrough
CT: control target
= control target key end

     0   :  { %s882_s1 = inlined_call_operand.vmem [shape: f32[128,128], index: 1, kind: input, shape index: {}]   ;;  %s883_s0 = inlined_call_operand.vmem [shape: f32[128,128], index: 0, kind: input, shape index: {}]   ;;  %s884_s2 = inlined_call_operand.vmem [shape: f32[128,128], index: 2, kind: input, shape index: {}]   ;;  %s885_s3 = inlined_call_operand.vmem [shape: f32[1,128], index: 3, kind: input, shape index: {}]   ;;  %s886_s4 = inlined_call_operand.vmem [shape: f32[128,128], index: 4, kind: output, shape index: {}]  }
   0x1   :  { %v84_v0 = vld [vmem:[%s882_s1 + $0x78] sm:$0xff]  ;;  %v83_v1 = vld [vmem:[%s882_s1 + $0x70] sm:$0xff]  ;;  %v82_v2 = vld [vmem:[%s882_s1 + $0x68] sm:$0xff] }
   0x2   :  { %550 = vmatprep.subr.mxu0 %v84_v0  ;;  %v81_v3 = vld [vmem:[%s882_s1 + $0x60] sm:$0xff]  ;;  %v80_v5 = vld [vmem:[%s882_s1 + $0x58] sm:$0xff]  ;;  %v79_v6 = vld [vmem:[%s882_s1 + $0x50] sm:$0xff] }
   0x3   :  { %551 = vmatpush3.msra.mxu0 %v84_v0  ;;  %v53_v4 = vld [vmem:[%s883_s0] sm:$0xff]  ;;  %v78_v7 = vld [vmem:[%s882_s1 + $0x48] sm:$0xff]  ;;  %v296_v8 = vld [vmem:[%s884_s2 + $0x78] sm:$0xff] }
   0x4   :  { %552 = vmatprep.subr.mxu0 %v83_v1  ;;  %582 = vmatprep.mubr.f32.mxu0 %v53_v4  ;;  %v295_v9 = vld [vmem:[%s884_s2 + $0x70] sm:$0xff]  ;;  %v77_v10 = vld [vmem:[%s882_s1 + $0x40] sm:$0xff]  ;;  %v294_v11 = vld [vmem:[%s884_s2 + $0x68] sm:$0xff] }
   0x5   :  { %553 = vmatpush3.msra.mxu0 %v83_v1  ;;  %606 = vmatprep.subr.mxu1 %v296_v8  ;;  %v76_v12 = vld [vmem:[%s882_s1 + $0x38] sm:$0xff]  ;;  %v293_v13 = vld [vmem:[%s884_s2 + $0x60] sm:$0xff]  ;;  %v75_v14 = vld [vmem:[%s882_s1 + $0x30] sm:$0xff] }
   0x6   :  { %554 = vmatprep.subr.mxu0 %v82_v2  ;;  %607 = vmatpush3.msra.mxu1 %v296_v8  ;;  %v292_v15 = vld [vmem:[%s884_s2 + $0x58] sm:$0xff]  ;;  %v74_v16 = vld [vmem:[%s882_s1 + $0x28] sm:$0xff]  ;;  %v291_v17 = vld [vmem:[%s884_s2 + $0x50] sm:$0xff] }
   0x7   :  { %555 = vmatpush3.msra.mxu0 %v82_v2  ;;  %608 = vmatprep.subr.mxu1 %v295_v9  ;;  %v73_v18 = vld [vmem:[%s882_s1 + $0x20] sm:$0xff]  ;;  %v290_v19 = vld [vmem:[%s884_s2 + $0x48] sm:$0xff]  ;;  %v72_v20 = vld [vmem:[%s882_s1 + $0x18] sm:$0xff] }
   0x8   :  { %556 = vmatprep.subr.mxu0 %v81_v3  ;;  %609 = vmatpush3.msra.mxu1 %v295_v9  ;;  %v289_v21 = vld [vmem:[%s884_s2 + $0x40] sm:$0xff]  ;;  %v71_v22 = vld [vmem:[%s882_s1 + $0x10] sm:$0xff]  ;;  %v288_v23 = vld [vmem:[%s884_s2 + $0x38] sm:$0xff] }
   0x9   :  { %557 = vmatpush3.msra.mxu0 %v81_v3  ;;  %610 = vmatprep.subr.mxu1 %v294_v11  ;;  %v70_v24 = vld [vmem:[%s882_s1 + $0x8] sm:$0xff]  ;;  %v287_v25 = vld [vmem:[%s884_s2 + $0x30] sm:$0xff]  ;;  %v69_v26 = vld [vmem:[%s882_s1] sm:$0xff] }
   0xa   :  { %558 = vmatprep.subr.mxu0 %v80_v5  ;;  %611 = vmatpush3.msra.mxu1 %v294_v11  ;;  %v286_v27 = vld [vmem:[%s884_s2 + $0x28] sm:$0xff]  ;;  %v285_v29 = vld [vmem:[%s884_s2 + $0x20] sm:$0xff]  ;;  %v55_v30 = vld [vmem:[%s883_s0 + $0x10] sm:$0xff] }
   0xb   :  { %559 = vmatpush3.msra.mxu0 %v80_v5  ;;  %612 = vmatprep.subr.mxu1 %v293_v13  ;;  %v54_v28 = vld [vmem:[%s883_s0 + $0x8] sm:$0xff]  ;;  %v284_v31 = vld [vmem:[%s884_s2 + $0x18] sm:$0xff]  ;;  %v283_v33 = vld [vmem:[%s884_s2 + $0x10] sm:$0xff] }
   0xc   :  { %560 = vmatprep.subr.mxu0 %v79_v6  ;;  %613 = vmatpush3.msra.mxu1 %v293_v13  ;;  %v56_v32 = vld [vmem:[%s883_s0 + $0x18] sm:$0xff]  ;;  %v57_v34 = vld [vmem:[%s883_s0 + $0x20] sm:$0xff]  ;;  %v58_v35 = vld [vmem:[%s883_s0 + $0x28] sm:$0xff] }
   0xd   :  { %561 = vmatpush3.msra.mxu0 %v79_v6  ;;  %614 = vmatprep.subr.mxu1 %v292_v15  ;;  %v59_v36 = vld [vmem:[%s883_s0 + $0x30] sm:$0xff]  ;;  %v60_v37 = vld [vmem:[%s883_s0 + $0x38] sm:$0xff]  ;;  %v61_v38 = vld [vmem:[%s883_s0 + $0x40] sm:$0xff] }
   0xe   :  { %562 = vmatprep.subr.mxu0 %v78_v7  ;;  %615 = vmatpush3.msra.mxu1 %v292_v15  ;;  %v62_v39 = vld [vmem:[%s883_s0 + $0x48] sm:$0xff]  ;;  %v63_v40 = vld [vmem:[%s883_s0 + $0x50] sm:$0xff]  ;;  %v64_v41 = vld [vmem:[%s883_s0 + $0x58] sm:$0xff] }
   0xf   :  { %563 = vmatpush3.msra.mxu0 %v78_v7  ;;  %616 = vmatprep.subr.mxu1 %v291_v17  ;;  %v65_v42 = vld [vmem:[%s883_s0 + $0x60] sm:$0xff]  ;;  %v66_v43 = vld [vmem:[%s883_s0 + $0x68] sm:$0xff]  ;;  %v67_v44 = vld [vmem:[%s883_s0 + $0x70] sm:$0xff] }
  0x10   :  { %564 = vmatprep.subr.mxu0 %v77_v10  ;;  %617 = vmatpush3.msra.mxu1 %v291_v17  ;;  %v68_v45 = vld [vmem:[%s883_s0 + $0x78] sm:$0xff]  ;;  %v282_v46 = vld [vmem:[%s884_s2 + $0x8] sm:$0xff]  ;;  %v281_v47 = vld [vmem:[%s884_s2] sm:$0xff] }
  0x11   :  { %565 = vmatpush3.msra.mxu0 %v77_v10  ;;  %618 = vmatprep.subr.mxu1 %v290_v19  ;;  %v485_v0 = vld [vmem:[%s885_s3] ss:$0 sm:$0xff] }
  0x12   :  { %566 = vmatprep.subr.mxu0 %v76_v12  ;;  %619 = vmatpush3.msra.mxu1 %v290_v19 }
  0x13   :  { %567 = vmatpush3.msra.mxu0 %v76_v12  ;;  %620 = vmatprep.subr.mxu1 %v289_v21 }
  0x14   :  { %568 = vmatprep.subr.mxu0 %v75_v14  ;;  %621 = vmatpush3.msra.mxu1 %v289_v21 }
  0x15   :  { %569 = vmatpush3.msra.mxu0 %v75_v14  ;;  %622 = vmatprep.subr.mxu1 %v288_v23 }
  0x16   :  { %570 = vmatprep.subr.mxu0 %v74_v16  ;;  %623 = vmatpush3.msra.mxu1 %v288_v23 }
  0x17   :  { %571 = vmatpush3.msra.mxu0 %v74_v16  ;;  %624 = vmatprep.subr.mxu1 %v287_v25 }
  0x18   :  { %572 = vmatprep.subr.mxu0 %v73_v18  ;;  %625 = vmatpush3.msra.mxu1 %v287_v25 }
  0x19   :  { %573 = vmatpush3.msra.mxu0 %v73_v18  ;;  %626 = vmatprep.subr.mxu1 %v286_v27 }
  0x1a   :  { %574 = vmatprep.subr.mxu0 %v72_v20  ;;  %627 = vmatpush3.msra.mxu1 %v286_v27 }
  0x1b   :  { %575 = vmatpush3.msra.mxu0 %v72_v20  ;;  %628 = vmatprep.subr.mxu1 %v285_v29 }
  0x1c   :  { %576 = vmatprep.subr.mxu0 %v71_v22  ;;  %629 = vmatpush3.msra.mxu1 %v285_v29 }
  0x1d   :  { %577 = vmatpush3.msra.mxu0 %v71_v22  ;;  %630 = vmatprep.subr.mxu1 %v284_v31 }
  0x1e   :  { %578 = vmatprep.subr.mxu0 %v70_v24  ;;  %631 = vmatpush3.msra.mxu1 %v284_v31 }
  0x1f   :  { %579 = vmatpush3.msra.mxu0 %v70_v24  ;;  %632 = vmatprep.subr.mxu1 %v283_v33 }
  0x20   :  { %580 = vmatprep.subr.mxu0 %v69_v26  ;;  %633 = vmatpush3.msra.mxu1 %v283_v33 }
  0x21   :  { %581 = vmatpush3.msra.mxu0 %v69_v26  ;;  %634 = vmatprep.subr.mxu1 %v282_v46 }
  0x22   :  { %583 = vmatmul.mubr.f32.vlgmr.msra.gmra.mxu0 %v54_v28  ;;  %635 = vmatpush3.msra.mxu1 %v282_v46 }
  0x23   :  { %585 = vmatprep.mubr.f32.mxu0 %v55_v30  ;;  %636 = vmatprep.subr.mxu1 %v281_v47 }
  0x24   :  { %637 = vmatpush3.msra.mxu1 %v281_v47 }
  0x26   :  { %586 = vmatmul.mubr.f32.gmra.mxu0 %v56_v32 }
  0x27   :  { %588 = vmatprep.mubr.f32.mxu0 %v57_v34 }
  0x2a   :  { %589 = vmatmul.mubr.f32.gmra.mxu0 %v58_v35 }
  0x2b   :  { %591 = vmatprep.mubr.f32.mxu0 %v59_v36 }
  0x2e   :  { %592 = vmatmul.mubr.f32.gmra.mxu0 %v60_v37 }
  0x2f   :  { %594 = vmatprep.mubr.f32.mxu0 %v61_v38 }
  0x32   :  { %595 = vmatmul.mubr.f32.gmra.mxu0 %v62_v39 }
  0x33   :  { %597 = vmatprep.mubr.f32.mxu0 %v63_v40 }
  0x36   :  { %598 = vmatmul.mubr.f32.gmra.mxu0 %v64_v41 }
  0x37   :  { %600 = vmatprep.mubr.f32.mxu0 %v65_v42 }
  0x3a   :  { %601 = vmatmul.mubr.f32.gmra.mxu0 %v66_v43 }
  0x3b   :  { %603 = vmatprep.mubr.f32.mxu0 %v67_v44 }
  0x3e   :  { %604 = vmatmul.mubr.f32.gmra.mxu0 %v68_v45 }
  0xe2   :  { %v584_v48 = vpop.f32.mrf.mxu0 }
  0xe4   :  { %v151_v49 = vpop.f32.mrf.mxu0 }
  0xe5   :  { %638 = vmatprep.mubr.f32.mxu1 %v151_v49 }
  0xe6   :  { %v587_v50 = vpop.f32.mrf.mxu0  ;;  %639 = vmatmul.mubr.f32.vlgmr.msra.gmra.mxu1 %v584_v48 }
  0xe8   :  { %v161_v51 = vpop.f32.mrf.mxu0 }
  0xe9   :  { %641 = vmatprep.mubr.f32.mxu1 %v161_v51 }
  0xea   :  { %v590_v52 = vpop.f32.mrf.mxu0  ;;  %642 = vmatmul.mubr.f32.gmra.mxu1 %v587_v50 }
  0xec   :  { %v171_v53 = vpop.f32.mrf.mxu0 }
  0xed   :  { %644 = vmatprep.mubr.f32.mxu1 %v171_v53 }
  0xee   :  { %v593_v54 = vpop.f32.mrf.mxu0  ;;  %645 = vmatmul.mubr.f32.gmra.mxu1 %v590_v52 }
  0xf0   :  { %v181_v55 = vpop.f32.mrf.mxu0 }
  0xf1   :  { %647 = vmatprep.mubr.f32.mxu1 %v181_v55 }
  0xf2   :  { %v596_v56 = vpop.f32.mrf.mxu0  ;;  %648 = vmatmul.mubr.f32.gmra.mxu1 %v593_v54 }
  0xf4   :  { %v191_v57 = vpop.f32.mrf.mxu0 }
  0xf5   :  { %650 = vmatprep.mubr.f32.mxu1 %v191_v57 }
  0xf6   :  { %v599_v58 = vpop.f32.mrf.mxu0  ;;  %651 = vmatmul.mubr.f32.gmra.mxu1 %v596_v56 }
  0xf8   :  { %v201_v59 = vpop.f32.mrf.mxu0 }
  0xf9   :  { %653 = vmatprep.mubr.f32.mxu1 %v201_v59 }
  0xfa   :  { %v602_v60 = vpop.f32.mrf.mxu0  ;;  %654 = vmatmul.mubr.f32.gmra.mxu1 %v599_v58 }
  0xfc   :  { %v211_v61 = vpop.f32.mrf.mxu0 }
  0xfd   :  { %656 = vmatprep.mubr.f32.mxu1 %v211_v61 }
  0xfe   :  { %v605_v62 = vpop.f32.mrf.mxu0  ;;  %657 = vmatmul.mubr.f32.gmra.mxu1 %v602_v60 }
 0x100   :  { %v221_v63 = vpop.f32.mrf.mxu0 }
 0x101   :  { %659 = vmatprep.mubr.f32.mxu1 %v221_v63 }
 0x102   :  { %660 = vmatmul.mubr.f32.gmra.mxu1 %v605_v62 }
 0x1a6   :  { %v640_v1 = vpop.f32.mrf.mxu1 }
 0x1a7   :  { %v376_v2 = vadd.f32 %v640_v1, %v485_v0 }
 0x1a8   :  { %v370_v3 = vpop.f32.mrf.mxu1 }
 0x1a9   :  { %v450_v4 = vmax.f32 %v376_v2, 0.0  ;;  %v371_v5 = vadd.f32 %v485_v0, %v370_v3 }
 0x1aa   :  { %v643_v6 = vpop.f32.mrf.mxu1 }
 0x1ab   :  { %466 = vst [vmem:[%s886_s4 + $0x8] sm:$0xff] %v450_v4  ;;  %v449_v7 = vmax.f32 %v371_v5, 0.0  ;;  %v386_v8 = vadd.f32 %v643_v6, %v485_v0 }
 0x1ac   :  { %v380_v9 = vpop.f32.mrf.mxu1 }
 0x1ad   :  { %465 = vst [vmem:[%s886_s4] sm:$0xff] %v449_v7  ;;  %v452_v10 = vmax.f32 %v386_v8, 0.0  ;;  %v381_v11 = vadd.f32 %v485_v0, %v380_v9 }
 0x1ae   :  { %v646_v12 = vpop.f32.mrf.mxu1 }
 0x1af   :  { %468 = vst [vmem:[%s886_s4 + $0x18] sm:$0xff] %v452_v10  ;;  %v451_v13 = vmax.f32 %v381_v11, 0.0  ;;  %v396_v14 = vadd.f32 %v646_v12, %v485_v0 }
 0x1b0   :  { %v390_v15 = vpop.f32.mrf.mxu1 }
 0x1b1   :  { %467 = vst [vmem:[%s886_s4 + $0x10] sm:$0xff] %v451_v13  ;;  %v454_v16 = vmax.f32 %v396_v14, 0.0  ;;  %v391_v17 = vadd.f32 %v485_v0, %v390_v15 }
 0x1b2   :  { %v649_v18 = vpop.f32.mrf.mxu1 }
 0x1b3   :  { %470 = vst [vmem:[%s886_s4 + $0x28] sm:$0xff] %v454_v16  ;;  %v453_v19 = vmax.f32 %v391_v17, 0.0  ;;  %v406_v20 = vadd.f32 %v649_v18, %v485_v0 }
 0x1b4   :  { %v400_v21 = vpop.f32.mrf.mxu1 }
 0x1b5   :  { %469 = vst [vmem:[%s886_s4 + $0x20] sm:$0xff] %v453_v19  ;;  %v456_v22 = vmax.f32 %v406_v20, 0.0  ;;  %v401_v23 = vadd.f32 %v485_v0, %v400_v21 }
 0x1b6   :  { %v652_v24 = vpop.f32.mrf.mxu1 }
 0x1b7   :  { %472 = vst [vmem:[%s886_s4 + $0x38] sm:$0xff] %v456_v22  ;;  %v455_v25 = vmax.f32 %v401_v23, 0.0  ;;  %v416_v26 = vadd.f32 %v652_v24, %v485_v0 }
 0x1b8   :  { %v410_v27 = vpop.f32.mrf.mxu1 }
 0x1b9   :  { %471 = vst [vmem:[%s886_s4 + $0x30] sm:$0xff] %v455_v25  ;;  %v458_v28 = vmax.f32 %v416_v26, 0.0  ;;  %v411_v29 = vadd.f32 %v485_v0, %v410_v27 }
 0x1ba   :  { %v655_v30 = vpop.f32.mrf.mxu1 }
 0x1bb   :  { %474 = vst [vmem:[%s886_s4 + $0x48] sm:$0xff] %v458_v28  ;;  %v457_v31 = vmax.f32 %v411_v29, 0.0  ;;  %v426_v32 = vadd.f32 %v655_v30, %v485_v0 }
 0x1bc   :  { %v420_v33 = vpop.f32.mrf.mxu1 }
 0x1bd   :  { %473 = vst [vmem:[%s886_s4 + $0x40] sm:$0xff] %v457_v31  ;;  %v460_v34 = vmax.f32 %v426_v32, 0.0  ;;  %v421_v35 = vadd.f32 %v485_v0, %v420_v33 }
 0x1be   :  { %v658_v36 = vpop.f32.mrf.mxu1 }
 0x1bf   :  { %476 = vst [vmem:[%s886_s4 + $0x58] sm:$0xff] %v460_v34  ;;  %v459_v37 = vmax.f32 %v421_v35, 0.0  ;;  %v436_v38 = vadd.f32 %v658_v36, %v485_v0 }
 0x1c0   :  { %v430_v39 = vpop.f32.mrf.mxu1 }
 0x1c1   :  { %475 = vst [vmem:[%s886_s4 + $0x50] sm:$0xff] %v459_v37  ;;  %v462_v40 = vmax.f32 %v436_v38, 0.0  ;;  %v431_v41 = vadd.f32 %v485_v0, %v430_v39 }
 0x1c2   :  { %v661_v42 = vpop.f32.mrf.mxu1 }
 0x1c3   :  { %478 = vst [vmem:[%s886_s4 + $0x68] sm:$0xff] %v462_v40  ;;  %v461_v43 = vmax.f32 %v431_v41, 0.0  ;;  %v446_v44 = vadd.f32 %v661_v42, %v485_v0 }
 0x1c4   :  { %v440_v45 = vpop.f32.mrf.mxu1 }
 0x1c5   :  { %477 = vst [vmem:[%s886_s4 + $0x60] sm:$0xff] %v461_v43  ;;  %v464_v46 = vmax.f32 %v446_v44, 0.0  ;;  %v441_v47 = vadd.f32 %v485_v0, %v440_v45 }
 0x1c7   :  { %480 = vst [vmem:[%s886_s4 + $0x78] sm:$0xff] %v464_v46  ;;  %v463_v48 = vmax.f32 %v441_v47, 0.0 }
 0x1c9   :  { %479 = vst [vmem:[%s886_s4 + $0x70] sm:$0xff] %v463_v48 }

</bundles_post_ra>
